<compile_context>
chip_gen: v6e
topology: v6e:2x2x1
jax: 0.10.0
libtpu: 0.0.40
codegen_flags: <defaults>
</compile_context>

<pallas_src>
import math

import jax
import jax.numpy as jnp
from jax.experimental import pallas as pl
from jax.experimental.pallas import tpu as pltpu


def _round_up(x, m):
    return (x + m - 1) // m * m


def gmf_kernel(u_ref, i_ref, w_ref, b_ref, o_ref):
    """One batch tile of packed rows.

    u_ref, i_ref : (TBP, Fp)   bf16 packed user / item embeddings
    w_ref        : (Fp, pack)  f32 block-diagonal predict-layer weight
    b_ref        : (1, 1)      f32 bias in SMEM
    o_ref        : (TBP, pack) f32 predictions (row-major == original order)
    """
    u = u_ref[...].astype(jnp.float32)
    it = i_ref[...].astype(jnp.float32)
    prod = u * it                                        # GMF interaction (VPU)
    # Segmented per-logical-row reduction as a block-diagonal matmul (MXU).
    pred = jax.lax.dot_general(
        prod, w_ref[...],
        dimension_numbers=(((1,), (0,)), ((), ())),
        preferred_element_type=jnp.float32)              # (TBP, pack)
    o_ref[...] = (pred + b_ref[0, 0]).astype(o_ref.dtype)


def gmf_forward(user, item, user_table, item_table, w, b, *, block_rows=4096):
    """Full GMF forward. `user`, `item` are int32 index vectors of shape (B,)."""
    B = int(user.shape[0])
    F = int(user_table.shape[1])

    # Lane packing: put `pack` logical rows side-by-side on the 128-lane axis.
    pack = 128 // F if (F <= 128 and 128 % F == 0) else 1
    Fp = F * pack

    packed_B = pl.cdiv(B, pack)
    tbp = min(block_rows, _round_up(packed_B, 8))        # packed rows / step
    packed_Bp = _round_up(packed_B, tbp)
    num_tiles = packed_Bp // tbp
    Bp = packed_Bp * pack                                # padded logical rows

    # Pad index vectors (pad rows use index 0; their outputs are sliced off).
    user_p = jnp.pad(user, (0, Bp - B))
    item_p = jnp.pad(item, (0, Bp - B))

    # Glue: the data-dependent embedding gather stays in plain JAX (bf16
    # stream into HBM, consumed tile-by-tile by the kernel).
    # TODO(synk): fuse the gather into the kernel (scalar-prefetched indices +
    # manual DMA from HBM-resident tables) to avoid the (B, F) bf16 round-trip
    # through HBM; per-row DMAs at F <= 128 are DMA-issue-overhead dominated,
    # so it needs a batched multi-row gather scheme.
    u_emb = jnp.take(user_table, user_p, axis=0).astype(jnp.bfloat16)  # (Bp, F)
    i_emb = jnp.take(item_table, item_p, axis=0).astype(jnp.bfloat16)  # (Bp, F)
    u_pk = u_emb.reshape(packed_Bp, Fp)                  # free row-major reshape
    i_pk = i_emb.reshape(packed_Bp, Fp)

    # Block-diagonal predict-layer weight: w_bd[r*F + f, c] = w[f] if r == c.
    w_flat = w.reshape(-1).astype(jnp.float32)           # (F,)
    eye = jnp.eye(pack, dtype=jnp.float32)               # (pack, pack)
    w_bd = (eye[:, None, :] * w_flat[None, :, None]).reshape(Fp, pack)
    b2 = jnp.asarray(b, jnp.float32).reshape(1, 1)

    bf16_bytes = jnp.dtype(jnp.bfloat16).itemsize
    cost = pl.CostEstimate(
        flops=3 * Bp * F,                                # mul + MAC per element
        transcendentals=0,
        bytes_accessed=(2 * packed_Bp * Fp * bf16_bytes  # u, i streams
                        + packed_Bp * pack * 4           # predictions
                        + Fp * pack * 4),                # weight
    )

    out = pl.pallas_call(
        gmf_kernel,
        out_shape=jax.ShapeDtypeStruct((packed_Bp, pack), jnp.float32),
        grid=(num_tiles,),
        in_specs=[
            pl.BlockSpec((tbp, Fp), lambda t: (t, 0)),          # user tile
            pl.BlockSpec((tbp, Fp), lambda t: (t, 0)),          # item tile
            pl.BlockSpec((Fp, pack), lambda t: (0, 0)),         # shared weight
            pl.BlockSpec(memory_space=pltpu.MemorySpace.SMEM),  # bias scalar
        ],
        out_specs=pl.BlockSpec((tbp, pack), lambda t: (t, 0)),
        compiler_params=pltpu.CompilerParams(
            dimension_semantics=("parallel",)),
        cost_estimate=cost,
    )(u_pk, i_pk, w_bd, b2)

    # (packed_Bp, pack) flattens row-major to original row order.
    return out.reshape(-1)[:B]                           # matches .view(-1)


def init_gmf_params(key, num_users, num_items, factor_num):
    """Deterministic init matching the PyTorch module's _init_weight_()."""
    k_u, k_i, k_w = jax.random.split(key, 3)
    # nn.init.normal_(std=0.01); tables stored bf16 to halve HBM traffic.
    user_table = (0.01 * jax.random.normal(
        k_u, (num_users, factor_num), jnp.float32)).astype(jnp.bfloat16)
    item_table = (0.01 * jax.random.normal(
        k_i, (num_items, factor_num), jnp.float32)).astype(jnp.bfloat16)
    # kaiming_uniform_(a=1, nonlinearity='sigmoid') -> gain=1, fan_in=factor_num
    bound = math.sqrt(3.0 / factor_num)
    w = jax.random.uniform(k_w, (1, factor_num), jnp.float32, -bound, bound)
    b = jnp.zeros((1,), jnp.float32)                     # bias.data.zero_()
    return user_table, item_table, w, b


if __name__ == "__main__":
    num_users, num_items, factor_num = 32, 48, 32
    B = 10                                               # exercises tail padding

    key = jax.random.PRNGKey(0)
    k_params, k_user, k_item = jax.random.split(key, 3)

    user_table, item_table, w, b = init_gmf_params(
        k_params, num_users, num_items, factor_num)

    user = jax.random.randint(k_user, (B,), 0, num_users, dtype=jnp.int32)
    item = jax.random.randint(k_item, (B,), 0, num_items, dtype=jnp.int32)

    pred = gmf_forward(user, item, user_table, item_table, w, b)
    pred = jax.block_until_ready(pred)

    # Pure-JAX reference (same bf16 embeddings, f32 math).
    u32 = jnp.take(user_table, user, axis=0).astype(jnp.float32)
    i32 = jnp.take(item_table, item, axis=0).astype(jnp.float32)
    ref = jnp.sum((u32 * i32) * w.astype(jnp.float32), axis=-1) + b[0]

    assert pred.shape == (B,)
    assert jnp.allclose(pred, ref, atol=1e-4, rtol=1e-3), (pred, ref)

    print("KERNEL_OK")
</pallas_src>

<mosaic_0001>
module attributes {stable_mosaic.version = 11 : i64} {
  func.func @gmf_kernel(%arg0: i32, %arg1: memref<8x128xbf16, #tpu.memory_space<vmem>>, %arg2: memref<8x128xbf16, #tpu.memory_space<vmem>>, %arg3: memref<128x4xf32, #tpu.memory_space<vmem>>, %arg4: memref<1x1xf32, #tpu.memory_space<smem>>, %arg5: memref<8x4xf32, #tpu.memory_space<vmem>>) attributes {dimension_semantics = [#tpu.dimension_semantics<parallel>], iteration_bounds = array<i64: 1>, scalar_prefetch = 0 : i64, scratch_operands = 0 : i64, tpu.core_type = #tpu.core_type<tc>, window_params = [{transform_indices = @transform_0, window_bounds = array<i64: 8, 128>}, {transform_indices = @transform_1, window_bounds = array<i64: 8, 128>}, {pipeline_mode = #tpu.pipeline_mode<synchronous>, transform_indices = @transform_2, window_bounds = array<i64: 128, 4>}, {transform_indices = @transform_3, window_bounds = array<i64: 1, 1>}, {transform_indices = @transform_4, window_bounds = array<i64: 8, 4>}]} {
    %c0 = arith.constant 0 : index
    %c0_0 = arith.constant 0 : index
    %0 = vector.load %arg1[%c0, %c0_0] : memref<8x128xbf16, #tpu.memory_space<vmem>>, vector<8x128xbf16>
    %1 = arith.extf %0 : vector<8x128xbf16> to vector<8x128xf32>
    %c0_1 = arith.constant 0 : index
    %c0_2 = arith.constant 0 : index
    %2 = vector.load %arg2[%c0_1, %c0_2] : memref<8x128xbf16, #tpu.memory_space<vmem>>, vector<8x128xbf16>
    %3 = arith.extf %2 : vector<8x128xbf16> to vector<8x128xf32>
    %4 = arith.mulf %1, %3 : vector<8x128xf32>
    %c0_3 = arith.constant 0 : index
    %c0_4 = arith.constant 0 : index
    %5 = vector.load %arg3[%c0_3, %c0_4] : memref<128x4xf32, #tpu.memory_space<vmem>>, vector<128x4xf32>
    %cst = arith.constant dense<0.000000e+00> : vector<8x4xf32>
    %6 = tpu.matmul %4, %5, %cst {dimension_numbers = #tpu.dot_dimension_numbers<[1], [0], [0], [1], [0, 0, 1, 1], [], []>} : vector<8x128xf32>, vector<128x4xf32>, vector<8x4xf32> -> vector<8x4xf32>
    %c0_5 = arith.constant 0 : index
    %c0_6 = arith.constant 0 : index
    %7 = memref.load %arg4[%c0_5, %c0_6] : memref<1x1xf32, #tpu.memory_space<smem>>
    %8 = vector.broadcast %7 : f32 to vector<8x4xf32>
    %9 = arith.addf %6, %8 : vector<8x4xf32>
    %c0_7 = arith.constant 0 : index
    %c0_8 = arith.constant 0 : index
    %10 = vector.load %arg5[%c0_7, %c0_8] : memref<8x4xf32, #tpu.memory_space<vmem>>, vector<8x4xf32>
    tpu.vector_store %arg5[%c0_7, %c0_8], %9 {strides = array<i32>} : memref<8x4xf32, #tpu.memory_space<vmem>>, vector<8x4xf32>,
    return
  }
  func.func @transform_0(%arg0: i32) -> (i32, i32) {
    %c0_i32 = arith.constant 0 : i32
    %c0_i32_0 = arith.constant 0 : i32
    return %arg0, %c0_i32 : i32, i32
  }
  func.func @transform_1(%arg0: i32) -> (i32, i32) {
    %c0_i32 = arith.constant 0 : i32
    %c0_i32_0 = arith.constant 0 : i32
    return %arg0, %c0_i32 : i32, i32
  }
  func.func @transform_2(%arg0: i32) -> (i32, i32) {
    %c0_i32 = arith.constant 0 : i32
    %c0_i32_0 = arith.constant 0 : i32
    %c0_i32_1 = arith.constant 0 : i32
    return %c0_i32, %c0_i32_0 : i32, i32
  }
  func.func @transform_3(%arg0: i32) -> (i32, i32) {
    %c0_i32 = arith.constant 0 : i32
    %c0_i32_0 = arith.constant 0 : i32
    %c0_i32_1 = arith.constant 0 : i32
    return %c0_i32, %c0_i32_0 : i32, i32
  }
  func.func @transform_4(%arg0: i32) -> (i32, i32) {
    %c0_i32 = arith.constant 0 : i32
    %c0_i32_0 = arith.constant 0 : i32
    return %arg0, %c0_i32 : i32, i32
  }
}

</mosaic_0001>

<bundles_post_ra>
// kernel: tpu_custom_call.1
= control target key start
LH: loop header
LB: loop body
LE: loop exit
PB: predicated region body
PF: predicated region fallthrough
CT: control target
= control target key end

     0   :  { %v171_v0 = vmov 0.0   ;;  %vm172_vm0 = vmmov 0   ;;  %vm111_vm1 = vcmask 31744   ;;  %s258_s2 = inlined_call_operand.vmem [shape: f32[128,4], index: 2, kind: input, shape index: {}]   ;;  %s259_s0 = inlined_call_operand.vmem [shape: bf16[8,128], index: 0, kind: input, shape index: {}]   ;;  %s260_s1 = inlined_call_operand.vmem [shape: bf16[8,128], index: 1, kind: input, shape index: {}]   ;;  %s261_s3 = inlined_call_operand.<no memory space> [shape: f32[1,1], index: 3, kind: input, shape index: {}]   ;;  %s262_s4 = inlined_call_operand.vmem [shape: f32[8,4], index: 4, kind: output, shape index: {}]  }
   0x1   :  { %134 = vmatprep.subr.mxu0 %v171_v0  ;;  %v38_v1 = vld [vmem:[%s258_s2 + $0x78] sm:$0xff]  ;;  %v37_v2 = vld [vmem:[%s258_s2 + $0x70] sm:$0xff]  ;;  %166 = vmatprep.mubr.msk.f32.mxu0 %vm172_vm0, %v171_v0  ;;  %v36_v3 = vld [vmem:[%s258_s2 + $0x68] sm:$0xff]  ;;  %v40_v22 = vstv %s261_s3 }
   0x2   :  { %135 = vmatpush3.msra.mxu0 %v38_v1  ;;  %v35_v4 = vld [vmem:[%s258_s2 + $0x60] sm:$0xff]  ;;  %v34_v5 = vld [vmem:[%s258_s2 + $0x58] sm:$0xff]  ;;  %v33_v6 = vld [vmem:[%s258_s2 + $0x50] sm:$0xff] }
   0x3   :  { %136 = vmatprep.subr.mxu0 %v171_v0  ;;  %v32_v7 = vld [vmem:[%s258_s2 + $0x48] sm:$0xff]  ;;  %v31_v8 = vld [vmem:[%s258_s2 + $0x40] sm:$0xff]  ;;  %v30_v9 = vld [vmem:[%s258_s2 + $0x38] sm:$0xff] }
   0x4   :  { %137 = vmatpush3.msra.mxu0 %v37_v2  ;;  %v29_v10 = vld [vmem:[%s258_s2 + $0x30] sm:$0xff]  ;;  %v28_v11 = vld [vmem:[%s258_s2 + $0x28] sm:$0xff]  ;;  %v27_v12 = vld [vmem:[%s258_s2 + $0x20] sm:$0xff] }
   0x5   :  { %138 = vmatprep.subr.mxu0 %v171_v0  ;;  %v18_v13 = vld [vmem:[%s259_s0] sm:$0xf]  ;;  %v26_v15 = vld [vmem:[%s258_s2 + $0x18] sm:$0xff]  ;;  %v25_v16 = vld [vmem:[%s258_s2 + $0x10] sm:$0xff] }
   0x6   :  { %139 = vmatpush3.msra.mxu0 %v36_v3  ;;  %v20_v14 = vld [vmem:[%s260_s1] sm:$0xf]  ;;  %v19_v17 = vunpack.c.l.bf16 %v18_v13  ;;  %v24_v19 = vld [vmem:[%s258_s2 + $0x8] sm:$0xff] }
   0x7   :  { %140 = vmatprep.subr.mxu0 %v171_v0  ;;  %v21_v18 = vunpack.c.l.bf16 %v20_v14  ;;  %v23_v20 = vld [vmem:[%s258_s2] sm:$0xff] }
   0x8   :  { %141 = vmatpush3.msra.mxu0 %v35_v4 }
   0x9   :  { %142 = vmatprep.subr.mxu0 %v171_v0  ;;  %v22_v21 = vmul.f32 %v21_v18, %v19_v17 }
   0xa   :  { %143 = vmatpush3.msra.mxu0 %v34_v5 }
   0xb   :  { %144 = vmatprep.subr.mxu0 %v171_v0 }
   0xc   :  { %145 = vmatpush3.msra.mxu0 %v33_v6 }
   0xd   :  { %146 = vmatprep.subr.mxu0 %v171_v0 }
   0xe   :  { %147 = vmatpush3.msra.mxu0 %v32_v7 }
   0xf   :  { %148 = vmatprep.subr.mxu0 %v171_v0 }
  0x10   :  { %149 = vmatpush3.msra.mxu0 %v31_v8 }
  0x11   :  { %150 = vmatprep.subr.mxu0 %v171_v0 }
  0x12   :  { %151 = vmatpush3.msra.mxu0 %v30_v9 }
  0x13   :  { %152 = vmatprep.subr.mxu0 %v171_v0 }
  0x14   :  { %153 = vmatpush3.msra.mxu0 %v29_v10 }
  0x15   :  { %154 = vmatprep.subr.mxu0 %v171_v0 }
  0x16   :  { %155 = vmatpush3.msra.mxu0 %v28_v11 }
  0x17   :  { %156 = vmatprep.subr.mxu0 %v171_v0 }
  0x18   :  { %157 = vmatpush3.msra.mxu0 %v27_v12 }
  0x19   :  { %158 = vmatprep.subr.mxu0 %v171_v0 }
  0x1a   :  { %159 = vmatpush3.msra.mxu0 %v26_v15 }
  0x1b   :  { %160 = vmatprep.subr.mxu0 %v171_v0 }
  0x1c   :  { %161 = vmatpush3.msra.mxu0 %v25_v16 }
  0x1d   :  { %162 = vmatprep.subr.mxu0 %v171_v0 }
  0x1e   :  { %163 = vmatpush3.msra.mxu0 %v24_v19 }
  0x1f   :  { %164 = vmatprep.subr.mxu0 %v171_v0 }
  0x20   :  { %165 = vmatpush3.msra.mxu0 %v23_v20 }
  0x21   :  { %167 = vmatmul.mubr.f32.vlgmr.msra.gmra.mxu0 %v22_v21 }
  0xe1   :  { %v107_v23 = vpop.f32.mrf.mxu0 }
  0xe2   :  { %v108_v24 = vadd.f32 %v107_v23, %v40_v22 }
  0xe3   :  { %v168_v25 = vpop.f32.mrf.mxu0 }
  0xe4   :  { %112 = vst.msk [vmem:[%s262_s4] sm:$0xff] %vm111_vm1, %v108_v24 }

</bundles_post_ra>
